<compile_context>
chip_gen: v5e
topology: v5e:2x2
jax: 0.10.0
libtpu: 0.0.40
codegen_flags: <defaults>
</compile_context>

<pallas_src>
import functools

import jax
import jax.numpy as jnp
from jax.experimental import pallas as pl
from jax.experimental.pallas import tpu as pltpu


# Budget for the double-buffered pixel + output tiles, kept well under the
# 32 MiB scoped-VMEM limit requested below (and under v7x's 64 MiB physical
# VMEM per TensorCore).
_VMEM_TILE_BUDGET = 24 * 1024 * 1024
_VMEM_LIMIT_BYTES = 32 * 1024 * 1024


def _denim_kernel(m_ref, x_ref, o_ref):
    # m_ref: (3, ch)   folded per-batch weight  M_b^T = (P @ T_b @ Q @ R)^T
    # x_ref: (ch, tm)  tile of flat-spatial pixels in native NCHW layout
    # o_ref: (3, tm)
    # No dtype upcast here: inputs are consumed in their native dtype and the
    # MXU accumulates in f32.
    y = jnp.dot(m_ref[...], x_ref[...], preferred_element_type=jnp.float32)
    o_ref[...] = y.astype(o_ref.dtype)


def _pick_tile(HW, bytes_per_lane):
    """Pick the lane tile size.

    Returns (tm, hw_pad):
      * tm      -- lane tile (multiple of 128, or == hw_pad)
      * hw_pad  -- possibly padded spatial extent (> HW only when no legal
                   divisor-based tile exists under the VMEM budget)
    """
    # Whole row fits: one contiguous DMA per channel row, grid = (bs, 1).
    if 2 * bytes_per_lane * HW <= _VMEM_TILE_BUDGET:
        return HW, HW
    tm_max = (_VMEM_TILE_BUDGET // (2 * bytes_per_lane)) // 128 * 128
    tm_max = max(tm_max, 128)
    # Largest 128-aligned divisor of HW under the budget.
    best = 0
    for t in range(128, tm_max + 1, 128):
        if HW % t == 0:
            best = t
    if best:
        return best, HW
    # Fallback: pad HW up to a multiple of 128 and tile the padded extent.
    hw_pad = ((HW + 127) // 128) * 128
    best = 128
    for t in range(128, tm_max + 1, 128):
        if hw_pad % t == 0:
            best = t
    return best, hw_pad


@functools.partial(jax.jit, static_argnames=("tm",))
def denim_to_canon(I, T, P, Q, R, *, tm=None):
    """I: (bs, ch, H, W), T: (bs, k*k) or (bs, k, k). Returns (bs, 3, H, W)."""
    bs, ch, H, W = I.shape
    k = P.shape[1]
    HW = H * W

    in_itemsize = jnp.dtype(I.dtype).itemsize
    bytes_per_lane = (ch + 3) * in_itemsize  # pixel tile + output tile per lane

    if tm is None:
        tm_eff, hw_pad = _pick_tile(HW, bytes_per_lane)
    else:
        tm_eff = min(tm, HW)
        hw_pad = ((HW + tm_eff - 1) // tm_eff) * tm_eff

    # Fold the weight chain once, in f32 for precision, then cast to the pixel
    # dtype so the per-tile GEMM runs natively in I.dtype (bf16 stays bf16 in
    # HBM/VMEM/MXU with an f32 accumulate).
    Tb = T.reshape(bs, k, k).astype(jnp.float32)
    MT = jnp.einsum(
        "ak,bkj,jc,ce->bea",
        P.astype(jnp.float32), Tb, Q.astype(jnp.float32), R.astype(jnp.float32),
    ).astype(I.dtype)  # (bs, 3, ch)

    # Native NCHW-flat view: no transpose, no extra HBM pass.
    x = I.reshape(bs, ch, HW)
    if hw_pad != HW:
        x = jnp.pad(x, ((0, 0), (0, 0), (0, hw_pad - HW)))

    grid = (bs, hw_pad // tm_eff)
    cost = pl.CostEstimate(
        flops=2 * bs * hw_pad * ch * 3,
        transcendentals=0,
        bytes_accessed=bs * hw_pad * (ch + 3) * in_itemsize
        + MT.size * jnp.dtype(MT.dtype).itemsize,
    )

    out_flat = pl.pallas_call(
        _denim_kernel,
        out_shape=jax.ShapeDtypeStruct((bs, 3, hw_pad), I.dtype),
        grid_spec=pltpu.PrefetchScalarGridSpec(
            num_scalar_prefetch=0,
            grid=grid,
            in_specs=[
                # Per-batch folded weight (few hundred bytes); block index only
                # changes with b, so it is not re-DMA'd across the HW axis.
                pl.BlockSpec((pl.Squeezed(), 3, ch), lambda b, i: (b, 0, 0)),
                # Pixel tile with HW on the lane axis.
                pl.BlockSpec((pl.Squeezed(), ch, tm_eff), lambda b, i: (b, 0, i)),
            ],
            out_specs=pl.BlockSpec(
                (pl.Squeezed(), 3, tm_eff), lambda b, i: (b, 0, i)),
        ),
        compiler_params=pltpu.CompilerParams(
            dimension_semantics=("parallel", "parallel"),
            vmem_limit_bytes=_VMEM_LIMIT_BYTES,
        ),
        cost_estimate=cost,
    )(MT, x)

    if hw_pad != HW:
        out_flat = out_flat[:, :, :HW]
    # (bs, 3, HW) is already NCHW-flat: just reshape.
    return out_flat.reshape(bs, 3, H, W)


def _kaiming_normal(key, shape):
    # torch.nn.init.kaiming_normal_ default: fan_in = shape[1], gain = sqrt(2)
    fan_in = shape[1]
    std = (2.0 / fan_in) ** 0.5
    return std * jax.random.normal(key, shape, dtype=jnp.float32)


if __name__ == "__main__":
    # Small shapes: bs=2, ch=4, H=W=16, k=8
    bs, ch, H, W, k = 2, 4, 16, 16, 8

    key = jax.random.PRNGKey(0)
    k_i, k_t, k_p, k_q, k_r = jax.random.split(key, 5)

    I = jax.random.normal(k_i, (bs, ch, H, W), dtype=jnp.float32)
    T = jax.random.normal(k_t, (bs, k * k), dtype=jnp.float32)  # torch-style (bs, k*k)

    P = _kaiming_normal(k_p, (ch, k))
    Q = _kaiming_normal(k_q, (k, ch))
    R = _kaiming_normal(k_r, (ch, 3))

    out = denim_to_canon(I, T, P, Q, R)
    out = jax.block_until_ready(out)

    # Silent sanity check against a pure-JAX reference of the torch forward.
    x_ref = jnp.transpose(I.reshape(bs, ch, H * W), (0, 2, 1))
    ref = jnp.einsum("bnc,ck,bkj,jd,de->bne", x_ref, P, T.reshape(bs, k, k), Q, R)
    ref = jnp.transpose(ref.reshape(bs, H, W, 3), (0, 3, 1, 2))
    assert out.shape == (bs, 3, H, W)
    assert jnp.allclose(out, ref, atol=1e-4, rtol=1e-4)

    print("KERNEL_OK")
</pallas_src>

<mosaic_0001>
module attributes {stable_mosaic.version = 11 : i64} {
  func.func @_denim_kernel(%arg0: i32, %arg1: i32, %arg2: memref<1x3x4xf32, #tpu.memory_space<vmem>>, %arg3: memref<1x4x256xf32, #tpu.memory_space<vmem>>, %arg4: memref<1x3x256xf32, #tpu.memory_space<vmem>>) attributes {dimension_semantics = [#tpu.dimension_semantics<parallel>, #tpu.dimension_semantics<parallel>], iteration_bounds = array<i64: 2, 1>, scalar_prefetch = 0 : i64, scratch_operands = 0 : i64, tpu.core_type = #tpu.core_type<tc>, window_params = [{transform_indices = @transform_0, window_bounds = array<i64: 1, 3, 4>}, {transform_indices = @transform_1, window_bounds = array<i64: 1, 4, 256>}, {transform_indices = @transform_2, window_bounds = array<i64: 1, 3, 256>}]} {
    %c0 = arith.constant 0 : index
    %c0_0 = arith.constant 0 : index
    %c0_1 = arith.constant 0 : index
    %0 = vector.load %arg2[%c0, %c0_0, %c0_1] : memref<1x3x4xf32, #tpu.memory_space<vmem>>, vector<1x3x4xf32>
    %1 = vector.shape_cast %0 : vector<1x3x4xf32> to vector<3x4xf32>
    %c0_2 = arith.constant 0 : index
    %c0_3 = arith.constant 0 : index
    %c0_4 = arith.constant 0 : index
    %2 = vector.load %arg3[%c0_2, %c0_3, %c0_4] : memref<1x4x256xf32, #tpu.memory_space<vmem>>, vector<1x4x256xf32>
    %3 = vector.shape_cast %2 : vector<1x4x256xf32> to vector<4x256xf32>
    %cst = arith.constant dense<0.000000e+00> : vector<3x256xf32>
    %4 = tpu.matmul %1, %3, %cst {dimension_numbers = #tpu.dot_dimension_numbers<[1], [0], [0], [1], [0, 0, 1, 1], [], []>} : vector<3x4xf32>, vector<4x256xf32>, vector<3x256xf32> -> vector<3x256xf32>
    %c0_5 = arith.constant 0 : index
    %c0_6 = arith.constant 0 : index
    %c0_7 = arith.constant 0 : index
    %5 = vector.load %arg4[%c0_5, %c0_6, %c0_7] : memref<1x3x256xf32, #tpu.memory_space<vmem>>, vector<1x3x256xf32>
    %6 = vector.shape_cast %5 : vector<1x3x256xf32> to vector<3x256xf32>
    %7 = vector.shape_cast %4 : vector<3x256xf32> to vector<1x3x256xf32>
    tpu.vector_store %arg4[%c0_5, %c0_6, %c0_7], %7 {strides = array<i32>} : memref<1x3x256xf32, #tpu.memory_space<vmem>>, vector<1x3x256xf32>,
    return
  }
  func.func @transform_0(%arg0: i32, %arg1: i32) -> (i32, i32, i32) {
    %c0_i32 = arith.constant 0 : i32
    %c0_i32_0 = arith.constant 0 : i32
    %c0_i32_1 = arith.constant 0 : i32
    return %arg0, %c0_i32, %c0_i32_0 : i32, i32, i32
  }
  func.func @transform_1(%arg0: i32, %arg1: i32) -> (i32, i32, i32) {
    %c0_i32 = arith.constant 0 : i32
    %c0_i32_0 = arith.constant 0 : i32
    return %arg0, %c0_i32, %arg1 : i32, i32, i32
  }
  func.func @transform_2(%arg0: i32, %arg1: i32) -> (i32, i32, i32) {
    %c0_i32 = arith.constant 0 : i32
    %c0_i32_0 = arith.constant 0 : i32
    return %arg0, %c0_i32, %arg1 : i32, i32, i32
  }
}

</mosaic_0001>

<bundles_post_ra>
// kernel: denim_to_canon.1
= control target key start
LH: loop header
LB: loop body
LE: loop exit
PB: predicated region body
PF: predicated region fallthrough
CT: control target
= control target key end

     0   :  { %s441_s9 = smov 0   ;;  %s443_s10 = smov 0   ;;  %s477_s0 = inlined_call_operand.vmem [shape: f32[2,3,4], index: 0, kind: input, shape index: {}]   ;;  %s478_s1 = inlined_call_operand.vmem [shape: f32[2,4,256], index: 1, kind: input, shape index: {}]   ;;  %s479_s2 = inlined_call_operand.vmem [shape: f32[2,3,256], index: 2, kind: output, shape index: {}]  }
   0x1   :  { %s445_s11 = smov 0  }
   0x2 LB: > { %s24_s12 = sadd.s32 1, %s420_s10  ;;  %p364_p0 = scmp.ge.s32.totalorder %s424_s11, 1  ;;  %s424_s11 = sphi %s445_s11, %s12_s11   ;;  %s420_s10 = sphi %s443_s10, %s481_s10   ;;  %s416_s9 = sphi %s441_s9, %s480_s9  }
   0x3   : > { %p26_p1 = scmp.ge.s32.totalorder %s24_s12, 2  ;;  %p142_p2 = scmp.lt.s32.totalorder %s424_s11, 3 }
   0x5   : > { %s483_s12 = smov (%p26_p1, %s24_s12), 0  ;;  %p143_p3 = pnand %p364_p0, %p142_p2 }
   0x6   : > { %p176_p4 = scmp.lt.s32.totalorder (!%p143_p3), %s416_s9, 1 }
   0x7   : > { %146 = sbr.rel (%p143_p3) target bundleno = 155 (0x9b), region = 28 }
   0xc   : > { %s485_s9 = smov (!%p176_p4, %s416_s9), 1  ;;  %vm210_vm0 = vcmask 1043456   ;;  %vm206_vm1 = vcmask 31744  }
   0xd   : > { %s376_s13 = sshll.u32 %s485_s9, 3  ;;  %s365_s17 = sshll.u32 %s485_s9, 2 }
   0xe   : > { %s188_s16 = scalar_lea.vmem %s478_s1, %s376_s13  ;;  %s179_s20 = scalar_lea.vmem %s477_s0, %s365_s17 }
   0xf   : > { %v201_v0 = vld [vmem:[%s188_s16] sm:$0xff]  ;;  %s198_s23 = scalar_lea.vmem %s479_s2, %s376_s13 }
  0x10   : > { %203 = vst [vmem:[#allocation1] ss:$2 sm:$0xff] %v201_v0  ;;  %v200_v1 = vld [vmem:[%s179_s20] sm:$0x7] }
  0x17   : > { %v205_v2 = vld.sshfl [vmem:[#allocation1 + $0x8] sm:$0xff pattern:$0x75316420]  ;;  %v204_v3 = vld.sshfl [vmem:[#allocation1] sm:$0xff pattern:$0x75316420] }
  0x18   : > { %372 = vmatpush.msk.msra.mxu1 %vm210_vm0, %v205_v2  ;;  %370 = vmatpush.msk.msra.mxu0 %vm210_vm0, %v204_v3 }
  0x19   : > { %373 = vmatmul.msk.f32.vlgmr.msra.gmra.mxu1 %vm206_vm1, %v200_v1  ;;  %371 = vmatmul.msk.f32.vlgmr.msra.gmra.mxu0 %vm206_vm1, %v200_v1 }
  0x96   : > { %v252_v4 = vpop.f32.mrf.mxu1  ;;  %v232_v5 = vpop.f32.mrf.mxu0 }
  0x97   : > { %v257_v6 = vrot.slane %v252_v4, 4 }
  0x99   : > { %v258_v7 = vsel %vm210_vm0, %v232_v5, %v257_v6 }
  0x9a   : > { %260 = vst [vmem:[%s198_s23] sm:$0x77] %v258_v7 }
  0x9b PF: > { %s12_s11 = sadd.s32 1, %s424_s11   ;;  %s480_s9 = smov %s420_s10 }
  0x9c   : > { %p9_p5 = scmp.ge.s32.totalorder %s12_s11, 4   ;;  %s481_s10 = smov %s483_s12 }
  0x9e   :  { %11 = sbr.rel (!%p9_p5) target bundleno = 2 (0x2), region = 61 }

</bundles_post_ra>
